<compile_context>
chip_gen: v7x
topology: tpu7x:2x2x1
jax: 0.10.0
libtpu: 0.0.40
codegen_flags: <defaults>
</compile_context>

<pallas_src>
import math

import jax
import jax.numpy as jnp
from jax.experimental import pallas as pl
from jax.experimental.pallas import tpu as pltpu

_MAX_TB = 8192  # batch-tile rows (multiple of 8)


def _lindyn_kernel(inp_ref, wt_ref, o_ref):
    # inp_ref: (TB, n+m)   wt_ref: (n+m, n)   o_ref: (TB, n)
    o_ref[...] = jnp.dot(
        inp_ref[...], wt_ref[...], preferred_element_type=jnp.float32
    ).astype(o_ref.dtype)


def linear_dynamics_packed(inp, wt):
    """Hot path: inp [..., n+m], wt [n+m, n] (= concat([A, B], 1).T) -> [..., n]."""
    nm, n = wt.shape
    assert inp.shape[-1] == nm, "last dim of input must be n+m"

    lead_shape = inp.shape[:-1]
    batch = math.prod(lead_shape) if lead_shape else 1
    inp2d = inp.reshape(batch, nm)

    # Batch tile: full batch if small (block dim == array dim is always legal),
    # otherwise a large multiple-of-8 tile; last partial block is padded by
    # Pallas, which is safe here (no cross-row reduction).
    tb = batch if batch <= _MAX_TB else _MAX_TB
    grid = (pl.cdiv(batch, tb),)

    itemsize = jnp.dtype(inp.dtype).itemsize
    cost = pl.CostEstimate(
        flops=2 * batch * n * nm,
        bytes_accessed=batch * nm * itemsize + batch * n * itemsize
        + nm * n * jnp.dtype(wt.dtype).itemsize,
        transcendentals=0,
    )

    out2d = pl.pallas_call(
        _lindyn_kernel,
        out_shape=jax.ShapeDtypeStruct((batch, n), inp.dtype),
        grid_spec=pltpu.PrefetchScalarGridSpec(
            num_scalar_prefetch=0,
            grid=grid,
            in_specs=[
                pl.BlockSpec((tb, nm), lambda i: (i, 0)),   # batch tile
                pl.BlockSpec((nm, n), lambda i: (0, 0)),    # weight: VMEM-resident
            ],
            out_specs=pl.BlockSpec((tb, n), lambda i: (i, 0)),
        ),
        compiler_params=pltpu.CompilerParams(
            dimension_semantics=("parallel",),
            vmem_limit_bytes=32 * 1024 * 1024,
        ),
        cost_estimate=cost,
    )(inp2d, wt)

    return out2d.reshape(*lead_shape, n)


def pack_weights(A, B):
    """Build W.T = concat([A, B], axis=1).T once, outside the hot path."""
    return jnp.concatenate([A, B], axis=1).T  # (n+m, n)


def linear_dynamics(inp, A, B):
    """Convenience wrapper matching LinearDynamics.forward(input) with params A, B."""
    return linear_dynamics_packed(inp, pack_weights(A, B))


if __name__ == "__main__":
    # Small shapes consistent with the module: n state dims, m control dims.
    n, m = 32, 16
    batch_dims = (2, 8)  # arbitrary leading dims, like PyTorch's [...]

    key = jax.random.PRNGKey(0)
    kA, kB, kx = jax.random.split(key, 3)

    # Deterministic "parameters" (torch.rand -> uniform [0, 1))
    A = jax.random.uniform(kA, (n, n), dtype=jnp.float32)
    B = jax.random.uniform(kB, (n, m), dtype=jnp.float32)

    inp = jax.random.normal(kx, (*batch_dims, n + m), dtype=jnp.float32)

    # Hoist the weight packing out of the per-call path, then run the kernel.
    wt = jax.block_until_ready(pack_weights(A, B))
    fwd = jax.jit(linear_dynamics_packed)
    out = jax.block_until_ready(fwd(inp, wt))

    # Reference check (pure JAX) to confirm semantics.
    ref = inp[..., :n] @ A.T + inp[..., n:] @ B.T
    assert out.shape == (*batch_dims, n)
    assert jnp.allclose(out, ref, atol=1e-4, rtol=1e-4)

    print("KERNEL_OK")
</pallas_src>

<mosaic_0001>
module attributes {stable_mosaic.version = 11 : i64} {
  func.func @_lindyn_kernel(%arg0: i32, %arg1: memref<16x48xf32, #tpu.memory_space<vmem>>, %arg2: memref<48x32xf32, #tpu.memory_space<vmem>>, %arg3: memref<16x32xf32, #tpu.memory_space<vmem>>) attributes {dimension_semantics = [#tpu.dimension_semantics<parallel>], iteration_bounds = array<i64: 1>, scalar_prefetch = 0 : i64, scratch_operands = 0 : i64, tpu.core_type = #tpu.core_type<tc>, window_params = [{transform_indices = @transform_0, window_bounds = array<i64: 16, 48>}, {pipeline_mode = #tpu.pipeline_mode<synchronous>, transform_indices = @transform_1, window_bounds = array<i64: 48, 32>}, {transform_indices = @transform_2, window_bounds = array<i64: 16, 32>}]} {
    %c0 = arith.constant 0 : index
    %c0_0 = arith.constant 0 : index
    %0 = vector.load %arg1[%c0, %c0_0] : memref<16x48xf32, #tpu.memory_space<vmem>>, vector<16x48xf32>
    %c0_1 = arith.constant 0 : index
    %c0_2 = arith.constant 0 : index
    %1 = vector.load %arg2[%c0_1, %c0_2] : memref<48x32xf32, #tpu.memory_space<vmem>>, vector<48x32xf32>
    %cst = arith.constant dense<0.000000e+00> : vector<16x32xf32>
    %2 = tpu.matmul %0, %1, %cst {dimension_numbers = #tpu.dot_dimension_numbers<[1], [0], [0], [1], [0, 0, 1, 1], [], []>} : vector<16x48xf32>, vector<48x32xf32>, vector<16x32xf32> -> vector<16x32xf32>
    %c0_3 = arith.constant 0 : index
    %c0_4 = arith.constant 0 : index
    %3 = vector.load %arg3[%c0_3, %c0_4] : memref<16x32xf32, #tpu.memory_space<vmem>>, vector<16x32xf32>
    tpu.vector_store %arg3[%c0_3, %c0_4], %2 {strides = array<i32>} : memref<16x32xf32, #tpu.memory_space<vmem>>, vector<16x32xf32>,
    return
  }
  func.func @transform_0(%arg0: i32) -> (i32, i32) {
    %c0_i32 = arith.constant 0 : i32
    %c0_i32_0 = arith.constant 0 : i32
    return %arg0, %c0_i32 : i32, i32
  }
  func.func @transform_1(%arg0: i32) -> (i32, i32) {
    %c0_i32 = arith.constant 0 : i32
    %c0_i32_0 = arith.constant 0 : i32
    %c0_i32_1 = arith.constant 0 : i32
    return %c0_i32, %c0_i32_0 : i32, i32
  }
  func.func @transform_2(%arg0: i32) -> (i32, i32) {
    %c0_i32 = arith.constant 0 : i32
    %c0_i32_0 = arith.constant 0 : i32
    return %arg0, %c0_i32 : i32, i32
  }
}

</mosaic_0001>

<bundles_post_ra>
// kernel: linear_dynamics_packed.1
= control target key start
LH: loop header
LB: loop body
LE: loop exit
PB: predicated region body
PF: predicated region fallthrough
CT: control target
= control target key end

     0   :  { %vm20_vm0 = vcmask 392192   ;;  %s241_s0 = inlined_call_operand.vmem [shape: f32[16,48], index: 0, kind: input, shape index: {}]   ;;  %s242_s1 = inlined_call_operand.vmem [shape: f32[48,32], index: 1, kind: input, shape index: {}]   ;;  %s243_s2 = inlined_call_operand.hbm [shape: f32[16,32], index: 2, kind: output, shape index: {}]  }
   0x1   :  { %v14_v0 = vld [vmem:[%s242_s1] sm:$0xff]  ;;  %v15_v1 = vld [vmem:[%s242_s1 + $0x8] sm:$0xff]  ;;  %v16_v2 = vld [vmem:[%s242_s1 + $0x10] sm:$0xff] }
   0x2   :  { %v146_v3 = vpack.c.bf16 %v15_v1, %v14_v0  ;;  %v17_v4 = vld [vmem:[%s242_s1 + $0x18] sm:$0xff]  ;;  %v18_v5 = vld [vmem:[%s242_s1 + $0x20] sm:$0xff]  ;;  %v19_v7 = vld [vmem:[%s242_s1 + $0x28] sm:$0xff] }
   0x3   :  { %v150_v6 = vpack.c.bf16 %v17_v4, %v16_v2  ;;  %v12_v8 = vld [vmem:[%s241_s0] sm:$0xff] }
   0x4   :  { %7 = vsyncpa [#allocation3], 0  ;;  %147 = vmatprep.subr.bf16.mxu0 %v146_v3  ;;  %143 = vmatprep.mubr.msk.f32.mxu0 %vm20_vm0, %v12_v8  ;;  %v154_v9 = vpack.c.bf16 %v19_v7, %v18_v5  ;;  %v13_v10 = vld [vmem:[%s241_s0 + $0x8] sm:$0xff]  ;;  %s185_s1 = smov [#allocation2]   ;;  %vm102_vm1 = vcmask 261120  }
   0x5   :  { %149 = vmatpush3.bf16.msra.mxu0 %v146_v3  ;;  %s110_s25 = sshll.u32 %s185_s1, 4  ;;  %s111_s25 = int_to_ptr.vmem [resolvable:$true] %s110_s25 }
   0x6   :  { %151 = vmatprep.subr.bf16.mxu0 %v150_v6  ;;  %s161_s26 = scalar_lea.vmem %s111_s25, 256  ;;  %p166_p1 = scmp.lt.s32.totalorder %s111_s25, %s111_s25 }
   0x7   :  { %p162_p0 = scmp.ne.s32.totalorder %s111_s25, %s161_s26  ;;  %p167_p2 = scmp.lt.s32.totalorder %s161_s26, %s161_s26 }
   0x9   :  { %153 = vmatpush3.bf16.msra.mxu0 %v150_v6  ;;  %p168_p3 = por %p167_p2, %p166_p1 }
   0xa   :  { %155 = vmatprep.subr.bf16.mxu0 %v154_v9 }
   0xb   :  { %p169_p4 = pnand %p168_p3, %p162_p0 }
   0xd   :  { %157 = vmatpush3.bf16.msra.mxu0 %v154_v9 }
  0x10   :  { %144 = vmatmul.mubr.msk.f32.vlgmr.msra.gmra.mrb[0].mxu0 %vm20_vm0, %v13_v10 }
  0xe3   :  { %v145_v11 = vpop.f32.mrb[0].mxu0 }
  0xe4   :  { %104 = vst.msk [vmem:[#allocation2 + $0x8] sm:$0xff] %vm102_vm1, %v145_v11  ;;  %v93_v12 = vpop.f32.mrb[1].mxu0 }
  0xe5   :  { %103 = vst.msk [vmem:[#allocation2] sm:$0xff] %vm102_vm1, %v93_v12 }
  0xe6   :  { %172 = shalt.err (!%p169_p4)
}
  0xe7   :  { %s173_s0 = scalar_lea.hbm %s243_s2, 256 }
  0xe8   :  { %p174_p5 = scmp.ne.s32.totalorder %s243_s2, %s173_s0  ;;  %p177_p6 = scmp.lt.u32.totalorder %s173_s0, %s243_s2 }
  0xea   :  { %p179_p7 = pnand %p177_p6, %p174_p5 }
  0xec   :  { %182 = shalt.err (!%p179_p7)
}
  0xed   :  { %s186_s5 = smov 128   ;;  %s187_s6 = smov 8  }
  0xee   :  { %116 = dma.vmem_to_hbm [thread:$0]  %s111_s25, 256, %s243_s2, [#allocation3], %s186_s5, %s186_s5, %s187_s6  }
  0xef   :  { %183 = dma.done.wait [#allocation3], 256  }
  0xf0   :  { %184 = vsyncadd [#allocation3], 4294967040 }
  0xf1   :  { %120 = vsyncpa [#allocation3], 1 }

</bundles_post_ra>
